<compile_context>
chip_gen: v6e
topology: v6e:2x2x1
jax: 0.10.0
libtpu: 0.0.40
codegen_flags: <defaults>
</compile_context>

<pallas_src>
import functools

import jax
import jax.numpy as jnp
from jax.experimental import pallas as pl
from jax.experimental.pallas import tpu as pltpu


def _cdiv(a, b):
    return -(-a // b)


def _round_up(a, b):
    return _cdiv(a, b) * b


def _pmi_kernel(s0_ref, s1_ref, t0_ref, t1_ref, nlg_ref, loss_ref, tsum_ref, *,
                beta, batch):
    # Inputs may arrive as bf16; all math runs in f32 on the VPU/EUP.
    s0 = s0_ref[...].astype(jnp.float32)          # (TILE_B, C)
    s1 = s1_ref[...].astype(jnp.float32)
    t0 = t0_ref[...].astype(jnp.float32)
    t1 = t1_ref[...].astype(jnp.float32)
    neg_log_g = nlg_ref[...]                       # (1, C) resident = -log(g)

    tb, c = t0.shape
    # Global row index of each tile row; masks the ragged last tile (and any
    # tiny-pad rows) without wrapper-side array copies.
    row = (jax.lax.broadcasted_iota(jnp.int32, (tb, 1), 0)
           + pl.program_id(0) * tb)
    valid = row < batch                            # (TILE_B, 1) bool

    def raw_pmi(sp, tp):
        # sum_c (sp*tp)^beta / g  ==  sum_c exp(beta*log(sp*tp) - log g)
        z = jnp.exp(beta * jnp.log(sp * tp) + neg_log_g)       # (TILE_B, C)
        return jnp.log(jnp.sum(z, axis=1, keepdims=True))      # (TILE_B, 1)

    loss = -(raw_pmi(s0, t1) + raw_pmi(s1, t0)) * 0.5
    # Invalid rows zeroed (also removes the +/-inf-in-padding hazard); they are
    # additionally clipped by the partial-block writeback.
    loss_ref[...] = jnp.where(valid, loss, 0.0)

    # Per-tile partial column sum of t0 folded to 8 sublanes (VALU-only).
    # Invalid (out-of-bounds) rows contribute zero.
    t0m = jnp.where(valid, t0, 0.0)
    tsum_ref[...] = jnp.sum(t0m.reshape(tb // 8, 8, c), axis=0)   # (8, C)


def pmi_loss(s0, s1, t0, t1, global_tprobs, *, beta, momentum,
             tile_b=1024, input_dtype=jnp.float32):
    """Returns (losses of shape (B,), updated global_tprobs of shape (1, C))."""
    B, C = s0.shape
    in_itemsize = jnp.dtype(input_dtype).itemsize

    s0 = s0.astype(input_dtype)
    s1 = s1.astype(input_dtype)
    t0 = t0.astype(input_dtype)
    t1 = t1.astype(input_dtype)
    g = global_tprobs.astype(jnp.float32).reshape(1, C)
    # Hoisted out of the kernel: one EUP log per call instead of per grid step.
    # Assumes g > 0 (guaranteed by the 1/C init and the L2-normalized EMA of
    # probabilities); no guard for caller-provided zero entries.
    neg_log_g = -jnp.log(g)

    # Only pad for the B < 8 edge case (sublane minimum); the ragged last tile
    # for any other B is handled in-kernel -> no full-array concatenate copies.
    B_eff = B
    if B < 8:
        pad = 8 - B
        fill = jnp.full((pad, C), 1.0 / C, input_dtype)
        s0 = jnp.concatenate([s0, fill], axis=0)
        s1 = jnp.concatenate([s1, fill], axis=0)
        t0 = jnp.concatenate([t0, fill], axis=0)   # masked in-kernel anyway
        t1 = jnp.concatenate([t1, fill], axis=0)
        B_eff = 8

    # ---- generation-aware tile size: ~40% of physical VMEM for the four
    # double-buffered input tiles (v5e/v6e ~51 MiB of 128; v7x ~25 MiB of 64).
    try:
        vmem_cap = int(getattr(pltpu.get_tpu_info(), "vmem_capacity_bytes",
                               64 << 20))
    except Exception:  # pragma: no cover - conservative fallback
        vmem_cap = 64 << 20
    input_budget = max(8 * 4 * 2 * C * in_itemsize, int(0.40 * vmem_cap))
    max_tb = max(8, (input_budget // (4 * 2 * C * in_itemsize)) // 8 * 8)

    tb = min(tile_b, max_tb, (B_eff // 8) * 8)
    tb = max(8, (tb // 8) * 8)
    num_tiles = _cdiv(B_eff, tb)

    # v7x load balance: prefer an even tile count (2 TensorCores) when it does
    # not shrink tiles below 512 rows (no measurable cost on 1-TC v5e/v6e).
    if num_tiles > 1 and num_tiles % 2 == 1:
        tb_even = max(8, _round_up(_cdiv(B_eff, num_tiles + 1), 8))
        if tb_even >= min(512, tb) and _cdiv(B_eff, tb_even) % 2 == 0:
            tb = tb_even
            num_tiles = _cdiv(B_eff, tb)

    # Deeper pipelining only when large C clamps the tile small and there are
    # enough grid steps to benefit (exposed-DMA regime).
    n_buf = 3 if (tb <= 128 and num_tiles >= 4) else 2

    in_bytes = 4 * n_buf * tb * C * in_itemsize        # 4 pipelined input tiles
    out_bytes = 2 * (tb * 1 + 8 * C) * 4               # double-buffered outputs
    resident = 2 * C * 4                               # resident neg_log_g
    vmem_limit = int(min(in_bytes + out_bytes + resident + (4 << 20),
                         int(vmem_cap * 0.75)))        # <= 48 MiB on v7x

    def in_tile_spec():
        if n_buf == 3:
            return pl.BlockSpec((tb, C), lambda i: (i, 0),
                                pipeline_mode=pl.Buffered(3))
        return pl.BlockSpec((tb, C), lambda i: (i, 0))

    kernel = functools.partial(_pmi_kernel, beta=float(beta), batch=B)

    loss2d, tsums = pl.pallas_call(
        kernel,
        out_shape=(
            jax.ShapeDtypeStruct((B_eff, 1), jnp.float32),
            jax.ShapeDtypeStruct((num_tiles * 8, C), jnp.float32),
        ),
        grid_spec=pltpu.PrefetchScalarGridSpec(
            num_scalar_prefetch=0,
            grid=(num_tiles,),
            in_specs=[
                in_tile_spec(),                           # s0
                in_tile_spec(),                           # s1
                in_tile_spec(),                           # t0
                in_tile_spec(),                           # t1
                pl.BlockSpec((1, C), lambda i: (0, 0)),   # -log(g) (resident)
            ],
            out_specs=[
                pl.BlockSpec((tb, 1), lambda i: (i, 0)),  # per-row losses
                pl.BlockSpec((8, C), lambda i: (i, 0)),   # t0 partial sums
            ],
        ),
        compiler_params=pltpu.CompilerParams(
            dimension_semantics=("parallel",),
            vmem_limit_bytes=vmem_limit,
        ),
    )(s0, s1, t0, t1, neg_log_g)

    losses = loss2d[:B, 0]

    # EMA buffer update epilogue (O(C), once, outside the kernel so the batch
    # grid axis can shard across TensorCores). Divisor is the true B.
    mean_t0 = jnp.sum(tsums, axis=0, keepdims=True) / B
    new_g = momentum * g + (1.0 - momentum) * mean_t0
    new_g = new_g / jnp.linalg.norm(new_g)
    return losses, new_g


def _reference(s0, s1, t0, t1, g, beta, momentum):
    def raw_pmi(sp, tp):
        return jnp.log(jnp.sum(jnp.power(sp * tp, beta) / g, axis=1))
    loss = -(raw_pmi(s0, t1) + raw_pmi(s1, t0)) / 2.0
    newg = momentum * g + (1.0 - momentum) * jnp.mean(t0, axis=0, keepdims=True)
    newg = newg / jnp.linalg.norm(newg)
    return loss, newg


def _make_inputs(key, B, C):
    k0, k1, k2, k3 = jax.random.split(key, 4)
    s0 = jax.nn.softmax(jax.random.normal(k0, (B, C), jnp.float32), axis=-1)
    s1 = jax.nn.softmax(jax.random.normal(k1, (B, C), jnp.float32), axis=-1)
    t0 = jax.nn.softmax(jax.random.normal(k2, (B, C), jnp.float32), axis=-1)
    t1 = jax.nn.softmax(jax.random.normal(k3, (B, C), jnp.float32), axis=-1)
    return s0, s1, t0, t1


if __name__ == "__main__":
    beta, momentum = 0.6, 0.9
    key = jax.random.PRNGKey(0)
    key_a, key_b = jax.random.split(key)

    # Case 1: small, single-tile (B = 8, C = n_classes = 128).
    B, C = 8, 128
    s0, s1, t0, t1 = _make_inputs(key_a, B, C)
    global_tprobs = jnp.ones((1, C), jnp.float32) / C   # buffer init from __init__

    losses, new_g = pmi_loss(s0, s1, t0, t1, global_tprobs,
                             beta=beta, momentum=momentum)
    jax.block_until_ready((losses, new_g))
    ref_losses, ref_g = _reference(s0, s1, t0, t1, global_tprobs, beta, momentum)
    assert losses.shape == (B,)
    assert jnp.allclose(losses, ref_losses, rtol=1e-5, atol=1e-5)
    assert jnp.allclose(new_g, ref_g, rtol=1e-5, atol=1e-5)

    # Case 2: B not a multiple of 8 / of the tile -> exercises the in-kernel
    # ragged-tile masking (no wrapper-side padding copies).
    B2, C2 = 300, 128
    s0b, s1b, t0b, t1b = _make_inputs(key_b, B2, C2)
    g2 = jnp.ones((1, C2), jnp.float32) / C2
    losses2, new_g2 = pmi_loss(s0b, s1b, t0b, t1b, g2,
                               beta=beta, momentum=momentum)
    jax.block_until_ready((losses2, new_g2))
    ref_losses2, ref_g2 = _reference(s0b, s1b, t0b, t1b, g2, beta, momentum)
    assert losses2.shape == (B2,)
    assert jnp.allclose(losses2, ref_losses2, rtol=1e-5, atol=1e-5)
    assert jnp.allclose(new_g2, ref_g2, rtol=1e-5, atol=1e-5)

    # Case 3: bf16 ingestion path (halves HBM bytes; looser tolerance).
    losses3, new_g3 = pmi_loss(s0b, s1b, t0b, t1b, g2,
                               beta=beta, momentum=momentum,
                               input_dtype=jnp.bfloat16)
    jax.block_until_ready((losses3, new_g3))
    assert losses3.shape == (B2,)
    assert jnp.allclose(losses3, ref_losses2, rtol=5e-2, atol=5e-2)
    assert jnp.allclose(new_g3, ref_g2, rtol=5e-2, atol=5e-2)

    print("KERNEL_OK")
</pallas_src>

<mosaic_0001>
module attributes {stable_mosaic.version = 11 : i64} {
  func.func @_pmi_kernel(%arg0: i32, %arg1: memref<8x128xf32, #tpu.memory_space<vmem>>, %arg2: memref<8x128xf32, #tpu.memory_space<vmem>>, %arg3: memref<8x128xf32, #tpu.memory_space<vmem>>, %arg4: memref<8x128xf32, #tpu.memory_space<vmem>>, %arg5: memref<1x128xf32, #tpu.memory_space<vmem>>, %arg6: memref<8x1xf32, #tpu.memory_space<vmem>>, %arg7: memref<8x128xf32, #tpu.memory_space<vmem>>) attributes {dimension_semantics = [#tpu.dimension_semantics<parallel>], iteration_bounds = array<i64: 1>, scalar_prefetch = 0 : i64, scratch_operands = 0 : i64, tpu.core_type = #tpu.core_type<tc>, window_params = [{transform_indices = @transform_0, window_bounds = array<i64: 8, 128>}, {transform_indices = @transform_1, window_bounds = array<i64: 8, 128>}, {transform_indices = @transform_2, window_bounds = array<i64: 8, 128>}, {transform_indices = @transform_3, window_bounds = array<i64: 8, 128>}, {pipeline_mode = #tpu.pipeline_mode<synchronous>, transform_indices = @transform_4, window_bounds = array<i64: 1, 128>}, {transform_indices = @transform_5, window_bounds = array<i64: 8, 1>}, {transform_indices = @transform_6, window_bounds = array<i64: 8, 128>}]} {
    %c0 = arith.constant 0 : index
    %c0_0 = arith.constant 0 : index
    %0 = vector.load %arg1[%c0, %c0_0] : memref<8x128xf32, #tpu.memory_space<vmem>>, vector<8x128xf32>
    %c0_1 = arith.constant 0 : index
    %c0_2 = arith.constant 0 : index
    %1 = vector.load %arg2[%c0_1, %c0_2] : memref<8x128xf32, #tpu.memory_space<vmem>>, vector<8x128xf32>
    %c0_3 = arith.constant 0 : index
    %c0_4 = arith.constant 0 : index
    %2 = vector.load %arg3[%c0_3, %c0_4] : memref<8x128xf32, #tpu.memory_space<vmem>>, vector<8x128xf32>
    %c0_5 = arith.constant 0 : index
    %c0_6 = arith.constant 0 : index
    %3 = vector.load %arg4[%c0_5, %c0_6] : memref<8x128xf32, #tpu.memory_space<vmem>>, vector<8x128xf32>
    %c0_7 = arith.constant 0 : index
    %c0_8 = arith.constant 0 : index
    %4 = vector.load %arg5[%c0_7, %c0_8] : memref<1x128xf32, #tpu.memory_space<vmem>>, vector<1x128xf32>
    %5 = tpu.iota {dimensions = array<i32: 0>} : vector<8x1xi32>
    %c8_i32 = arith.constant 8 : i32
    %6 = arith.muli %arg0, %c8_i32 : i32
    %7 = vector.broadcast %6 : i32 to vector<8x1xi32>
    %8 = arith.addi %5, %7 : vector<8x1xi32>
    %c8_i32_9 = arith.constant 8 : i32
    %9 = vector.broadcast %c8_i32_9 : i32 to vector<8x1xi32>
    %10 = arith.cmpi slt, %8, %9 : vector<8x1xi32>
    %11 = arith.mulf %0, %3 : vector<8x128xf32>
    %12 = math.log %11 : vector<8x128xf32>
    %cst = arith.constant 6.000000e-01 : f32
    %13 = vector.broadcast %cst : f32 to vector<8x128xf32>
    %14 = arith.mulf %13, %12 : vector<8x128xf32>
    %15 = vector.broadcast %4 : vector<1x128xf32> to vector<8x128xf32>
    %16 = arith.addf %14, %15 : vector<8x128xf32>
    %17 = math.exp %16 : vector<8x128xf32>
    %cst_10 = arith.constant dense<0.000000e+00> : vector<8xf32>
    %18 = vector.multi_reduction <add>, %17, %cst_10 [1] : vector<8x128xf32> to vector<8xf32>
    %19 = vector.shape_cast %18 : vector<8xf32> to vector<8x1xf32>
    %20 = math.log %19 : vector<8x1xf32>
    %21 = arith.mulf %1, %2 : vector<8x128xf32>
    %22 = math.log %21 : vector<8x128xf32>
    %cst_11 = arith.constant 6.000000e-01 : f32
    %23 = vector.broadcast %cst_11 : f32 to vector<8x128xf32>
    %24 = arith.mulf %23, %22 : vector<8x128xf32>
    %25 = vector.broadcast %4 : vector<1x128xf32> to vector<8x128xf32>
    %26 = arith.addf %24, %25 : vector<8x128xf32>
    %27 = math.exp %26 : vector<8x128xf32>
    %cst_12 = arith.constant dense<0.000000e+00> : vector<8xf32>
    %28 = vector.multi_reduction <add>, %27, %cst_12 [1] : vector<8x128xf32> to vector<8xf32>
    %29 = vector.shape_cast %28 : vector<8xf32> to vector<8x1xf32>
    %30 = math.log %29 : vector<8x1xf32>
    %31 = arith.addf %20, %30 : vector<8x1xf32>
    %cst_13 = arith.constant 0.000000e+00 : f32
    %32 = vector.broadcast %cst_13 : f32 to vector<8x1xf32>
    %33 = arith.subf %32, %31 : vector<8x1xf32>
    %cst_14 = arith.constant 5.000000e-01 : f32
    %34 = vector.broadcast %cst_14 : f32 to vector<8x1xf32>
    %35 = arith.mulf %33, %34 : vector<8x1xf32>
    %cst_15 = arith.constant 0.000000e+00 : f32
    %36 = vector.broadcast %cst_15 : f32 to vector<8x1xf32>
    %37 = arith.select %10, %35, %36 : vector<8x1xi1>, vector<8x1xf32>
    %c0_16 = arith.constant 0 : index
    %c0_17 = arith.constant 0 : index
    %38 = vector.load %arg6[%c0_16, %c0_17] : memref<8x1xf32, #tpu.memory_space<vmem>>, vector<8x1xf32>
    tpu.vector_store %arg6[%c0_16, %c0_17], %37 {strides = array<i32>} : memref<8x1xf32, #tpu.memory_space<vmem>>, vector<8x1xf32>,
    %cst_18 = arith.constant 0.000000e+00 : f32
    %39 = vector.shape_cast %10 : vector<8x1xi1> to vector<8x1xi1>
    %40 = vector.broadcast %39 : vector<8x1xi1> to vector<8x128xi1>
    %41 = vector.broadcast %cst_18 : f32 to vector<8x128xf32>
    %42 = arith.select %40, %2, %41 : vector<8x128xi1>, vector<8x128xf32>
    %43 = vector.shape_cast %42 : vector<8x128xf32> to vector<1x8x128xf32>
    %cst_19 = arith.constant dense<0.000000e+00> : vector<8x128xf32>
    %44 = vector.multi_reduction <add>, %43, %cst_19 [0] : vector<1x8x128xf32> to vector<8x128xf32>
    %c0_20 = arith.constant 0 : index
    %c0_21 = arith.constant 0 : index
    %45 = vector.load %arg7[%c0_20, %c0_21] : memref<8x128xf32, #tpu.memory_space<vmem>>, vector<8x128xf32>
    tpu.vector_store %arg7[%c0_20, %c0_21], %44 {strides = array<i32>} : memref<8x128xf32, #tpu.memory_space<vmem>>, vector<8x128xf32>,
    return
  }
  func.func @transform_0(%arg0: i32) -> (i32, i32) {
    %c0_i32 = arith.constant 0 : i32
    %c0_i32_0 = arith.constant 0 : i32
    return %arg0, %c0_i32 : i32, i32
  }
  func.func @transform_1(%arg0: i32) -> (i32, i32) {
    %c0_i32 = arith.constant 0 : i32
    %c0_i32_0 = arith.constant 0 : i32
    return %arg0, %c0_i32 : i32, i32
  }
  func.func @transform_2(%arg0: i32) -> (i32, i32) {
    %c0_i32 = arith.constant 0 : i32
    %c0_i32_0 = arith.constant 0 : i32
    return %arg0, %c0_i32 : i32, i32
  }
  func.func @transform_3(%arg0: i32) -> (i32, i32) {
    %c0_i32 = arith.constant 0 : i32
    %c0_i32_0 = arith.constant 0 : i32
    return %arg0, %c0_i32 : i32, i32
  }
  func.func @transform_4(%arg0: i32) -> (i32, i32) {
    %c0_i32 = arith.constant 0 : i32
    %c0_i32_0 = arith.constant 0 : i32
    %c0_i32_1 = arith.constant 0 : i32
    return %c0_i32, %c0_i32_0 : i32, i32
  }
  func.func @transform_5(%arg0: i32) -> (i32, i32) {
    %c0_i32 = arith.constant 0 : i32
    %c0_i32_0 = arith.constant 0 : i32
    return %arg0, %c0_i32 : i32, i32
  }
  func.func @transform_6(%arg0: i32) -> (i32, i32) {
    %c0_i32 = arith.constant 0 : i32
    %c0_i32_0 = arith.constant 0 : i32
    return %arg0, %c0_i32 : i32, i32
  }
}

</mosaic_0001>

<bundles_post_ra>
// kernel: tpu_custom_call.1
= control target key start
LH: loop header
LB: loop body
LE: loop exit
PB: predicated region body
PF: predicated region fallthrough
CT: control target
= control target key end

     0   :  { %12 = vsyncpa [#allocation3], 0  ;;  %s328_s0 = inlined_call_operand.hbm [shape: f32[8,128], index: 0, kind: input, shape index: {}]   ;;  %s329_s1 = inlined_call_operand.hbm [shape: f32[8,128], index: 1, kind: input, shape index: {}]   ;;  %s330_s2 = inlined_call_operand.hbm [shape: f32[8,128], index: 2, kind: input, shape index: {}]   ;;  %s331_s3 = inlined_call_operand.hbm [shape: f32[8,128], index: 3, kind: input, shape index: {}]   ;;  %s332_s4 = inlined_call_operand.vmem [shape: f32[1,128], index: 4, kind: input, shape index: {}]   ;;  %s333_s5 = inlined_call_operand.vmem [shape: f32[8,1], index: 5, kind: output, shape index: {0}]   ;;  %s334_s6 = inlined_call_operand.hbm [shape: f32[8,128], index: 6, kind: output, shape index: {1}]  }
   0x1   :  { %13 = vsyncpa [#allocation6], 0 }
   0x2   :  { %14 = vsyncpa [#allocation9], 0 }
   0x3   :  { %15 = vsyncpa [#allocation4], 0  ;;  %s267_s21 = smov [#allocation5]   ;;  %s268_s23 = smov [#allocation2]  }
   0x4   :  { %s32_s22 = sshll.u32 %s267_s21, 4  ;;  %s22_s24 = sshll.u32 %s268_s23, 4  ;;  %s33_s22 = int_to_ptr.vmem [resolvable:$true] %s32_s22  ;;  %s23_s24 = int_to_ptr.vmem [resolvable:$true] %s22_s24 }
   0x5   :  { %s167_s25 = scalar_lea.vmem %s33_s22, 128  ;;  %p172_p1 = scmp.lt.s32.totalorder %s33_s22, %s33_s22 }
   0x6   :  { %p168_p0 = scmp.ne.s32.totalorder %s33_s22, %s167_s25  ;;  %p173_p2 = scmp.lt.s32.totalorder %s167_s25, %s167_s25 }
   0x8   :  { %p174_p3 = por %p173_p2, %p172_p1 }
   0xa   :  { %p175_p4 = pnand %p174_p3, %p168_p0 }
   0xc   :  { %178 = shalt.err (!%p175_p4)
}
   0xd   :  { %35 = dma.hbm_to_vmem [thread:$0]  %s329_s1, 128, %s33_s22, [#allocation6]  }
   0xe   :  { %s187_s28 = scalar_lea.vmem %s23_s24, 128  ;;  %p192_p6 = scmp.lt.s32.totalorder %s23_s24, %s23_s24 }
   0xf   :  { %p188_p5 = scmp.ne.s32.totalorder %s23_s24, %s187_s28  ;;  %p193_p7 = scmp.lt.s32.totalorder %s187_s28, %s187_s28 }
  0x11   :  { %p194_p8 = por %p193_p7, %p192_p6 }
  0x13   :  { %p195_p9 = pnand %p194_p8, %p188_p5 }
  0x15   :  { %198 = shalt.err (!%p195_p9)
}
  0x16   :  { %25 = dma.hbm_to_vmem [thread:$0]  %s328_s0, 128, %s23_s24, [#allocation3]  }
  0x17   :  { %s269_s7 = smov [#allocation7]   ;;  %s270_s9 = smov [#allocation8]  }
  0x18   :  { %s42_s8 = sshll.u32 %s269_s7, 4  ;;  %s52_s10 = sshll.u32 %s270_s9, 4  ;;  %s43_s8 = int_to_ptr.vmem [resolvable:$true] %s42_s8  ;;  %s53_s10 = int_to_ptr.vmem [resolvable:$true] %s52_s10 }
  0x19   :  { %s207_s11 = scalar_lea.vmem %s43_s8, 128  ;;  %p212_p11 = scmp.lt.s32.totalorder %s43_s8, %s43_s8 }
  0x1a   :  { %p208_p10 = scmp.ne.s32.totalorder %s43_s8, %s207_s11  ;;  %p213_p12 = scmp.lt.s32.totalorder %s207_s11, %s207_s11 }
  0x1c   :  { %p214_p13 = por %p213_p12, %p212_p11 }
  0x1e   :  { %p215_p0 = pnand %p214_p13, %p208_p10 }
  0x20   :  { %218 = shalt.err (!%p215_p0)
}
  0x21   :  { %45 = dma.hbm_to_vmem [thread:$0]  %s330_s2, 128, %s43_s8, [#allocation6]  }
  0x22   :  { %s227_s13 = scalar_lea.vmem %s53_s10, 128  ;;  %p232_p2 = scmp.lt.s32.totalorder %s53_s10, %s53_s10 }
  0x23   :  { %p228_p1 = scmp.ne.s32.totalorder %s53_s10, %s227_s13  ;;  %p233_p3 = scmp.lt.s32.totalorder %s227_s13, %s227_s13 }
  0x25   :  { %p234_p4 = por %p233_p3, %p232_p2 }
  0x27   :  { %p235_p5 = pnand %p234_p4, %p228_p1 }
  0x29   :  { %238 = shalt.err (!%p235_p5)
}
  0x2a   :  { %55 = dma.hbm_to_vmem [thread:$0]  %s331_s3, 128, %s53_s10, [#allocation9]  }
  0x2b   :  { %259 = dma.done.wait [#allocation3], 128  }
  0x2c   :  { %260 = vsyncadd [#allocation3], 4294967168 }
  0x2d   :  { %261 = dma.done.wait [#allocation6], 256  }
  0x2e   :  { %262 = vsyncadd [#allocation6], 4294967040 }
  0x2f   :  { %263 = dma.done.wait [#allocation9], 128  }
  0x30   :  { %264 = vsyncadd [#allocation9], 4294967168  ;;  %v70_v0 = vld [vmem:[#allocation2] sm:$0xff]  ;;  %v71_v1 = vld [vmem:[#allocation5] sm:$0xff]  ;;  %s271_s15 = smov [#allocation10]  }
  0x31   :  { %v72_v2 = vld [vmem:[#allocation7] sm:$0xff]  ;;  %v73_v3 = vld [vmem:[#allocation8] sm:$0xff]  ;;  %v141_v10 = vld [vmem:[%s332_s4] ss:$0 sm:$0xff]  ;;  %s128_s16 = sshll.u32 %s271_s15, 4  ;;  %s129_s16 = int_to_ptr.vmem [resolvable:$true] %s128_s16 }
  0x32   :  { %v98_v4 = vmul.f32 %v72_v2, %v71_v1  ;;  %119 = vst [vmem:[#allocation10] sm:$0xff] %v72_v2  ;;  %v81_v5 = vmul.f32 %v73_v3, %v70_v0  ;;  %s239_s17 = scalar_lea.vmem %s129_s16, 128  ;;  %p244_p7 = scmp.lt.s32.totalorder %s129_s16, %s129_s16 }
  0x33   :  { %p240_p6 = scmp.ne.s32.totalorder %s129_s16, %s239_s17  ;;  %p245_p8 = scmp.lt.s32.totalorder %s239_s17, %s239_s17 }
  0x34   :  { %147 = vlog2.f32 %v98_v4 }
  0x35   :  { %149 = vlog2.f32 %v81_v5  ;;  %p246_p9 = por %p245_p8, %p244_p7 }
  0x37   :  { %p247_p10 = pnand %p246_p9, %p240_p6 }
  0x41   :  { %v148_v6 = vpop.eup %147 }
  0x42   :  { %v150_v7 = vpop.eup %149  ;;  %v100_v8 = vmul.f32 0.6931472, %v148_v6 }
  0x43   :  { %v83_v9 = vmul.f32 0.6931472, %v150_v7 }
  0x44   :  { %v101_v11 = vmul.f32 0.6, %v100_v8 }
  0x45   :  { %v84_v12 = vmul.f32 0.6, %v83_v9 }
  0x46   :  { %v102_v13 = vadd.f32 %v141_v10, %v101_v11 }
  0x47   :  { %v91_v14 = vadd.f32 %v141_v10, %v84_v12 }
  0x48   :  { %v103_v16 = vmul.f32 1.442695, %v102_v13 }
  0x49   :  { %v92_v15 = vmul.f32 1.442695, %v91_v14 }
  0x4b   :  { %151 = vpow2.f32 %v92_v15 }
  0x4c   :  { %153 = vpow2.f32 %v103_v16 }
  0x58   :  { %v152_v17 = vpop.eup %151 }
  0x59   :  { %94 = vadd.xlane.f32.xlu0 %v152_v17  ;;  %v154_v18 = vpop.eup %153 }
  0x5d   :  { %105 = vadd.xlane.f32.xlu0 %v154_v18 }
  0x5e   :  { %250 = shalt.err (!%p247_p10)
}
  0x5f   :  { %131 = dma.vmem_to_hbm [thread:$0]  %s129_s16, 128, %s334_s6, [#allocation4]   ;;  %vm113_vm0 = vcmask 7168  }
  0xe2   :  { %v95_v19 = vpop.xlane.xlu0 %94 }
  0xe3   :  { %155 = vlog2.f32 %v95_v19 }
  0xe6   :  { %v106_v20 = vpop.xlane.xlu0 %105 }
  0xe7   :  { %157 = vlog2.f32 %v106_v20 }
  0xf0   :  { %v156_v21 = vpop.eup %155 }
  0xf1   :  { %v97_v23 = vmul.f32 0.6931472, %v156_v21 }
  0xf4   :  { %v158_v22 = vpop.eup %157 }
  0xf5   :  { %v108_v24 = vmul.f32 0.6931472, %v158_v22 }
  0xf7   :  { %v109_v25 = vadd.f32 %v108_v24, %v97_v23 }
  0xf9   :  { %v110_v26 = vsub.f32 0.0, %v109_v25 }
  0xfb   :  { %v111_v27 = vmul.f32 0.5, %v110_v26 }
  0xfd   :  { %114 = vst.msk [vmem:[%s333_s5] sm:$0xff] %vm113_vm0, %v111_v27 }
  0xfe   :  { %265 = dma.done.wait [#allocation4], 128  }
  0xff   :  { %266 = vsyncadd [#allocation4], 4294967168 }
 0x100   :  { %137 = vsyncpa [#allocation3], 1 }
 0x101   :  { %138 = vsyncpa [#allocation6], 1 }
 0x102   :  { %139 = vsyncpa [#allocation9], 1 }
 0x103   :  { %140 = vsyncpa [#allocation4], 1 }

</bundles_post_ra>
